<compile_context>
chip_gen: v6e
topology: v6e:2x2x1
jax: 0.10.0
libtpu: 0.0.40
codegen_flags: <defaults>
</compile_context>

<pallas_src>
import jax
import jax.numpy as jnp
from jax.experimental import pallas as pl
from jax.experimental.pallas import tpu as pltpu


def _sfconv_fuse_kernel(high_att_ref, low_att_ref, low_ref, high_ref,
                        w_out_ref, b_out_ref, out_ref):
    # Tiles are (C, T): channels on sublanes, flattened spatial on lanes.
    low = low_ref[0].astype(jnp.float32)        # (C, T)
    high = high_ref[0].astype(jnp.float32)      # (C, T)
    h_att = high_att_ref[0]                     # (C, 1)  f32
    l_att = low_att_ref[0]                      # (C, 1)  f32

    # Weighted fusion (broadcast attention over spatial lanes).
    fea = high * h_att + low * l_att            # (C, T)

    # 1x1 out-conv over every pixel of the tile: (C, C) @ (C, T) on the MXU.
    out = jnp.dot(w_out_ref[...], fea,
                  preferred_element_type=jnp.float32) + b_out_ref[...]
    out_ref[0] = out.astype(out_ref.dtype)


def _choose_tile_p(P, C, itemsize, vmem_budget_bytes=12 * 1024 * 1024):
    """Largest TILE_P (multiple of 128 dividing P) that keeps the streamed
    (2 inputs + 1 output) x 2 pipeline buffers under the VMEM budget."""
    if P % 128 != 0:
        return P  # full-extent last dim (exempt from the (8,128) rule)
    max_tile = max(128, vmem_budget_bytes // (6 * C * itemsize))
    max_tile = (max_tile // 128) * 128
    if max_tile >= P:
        return P
    for cand in range(max_tile, 0, -128):
        if P % cand == 0:
            return cand
    return P


def sfconv_pallas(low, high, params, *, tile_p=None, stream_dtype=None):
    """low, high: (N, C, H, W) (PyTorch NCHW convention)."""
    N, C, H, W = low.shape
    P = H * W
    f32 = jnp.float32

    # --- squeeze / attention chain: tiny, done once per image in plain XLA ---
    w_fc, b_fc = params["w_fc"], params["b_fc"][:, 0]
    # Fuse the two d->C convs into one (2C, d) matmul.
    w_hl = jnp.concatenate([params["w_h"], params["w_l"]], axis=0)        # (2C, d)
    b_hl = jnp.concatenate([params["b_h"], params["b_l"]], axis=0)[:, 0]  # (2C,)

    g = (low.astype(f32) + high.astype(f32)).mean(axis=(2, 3))            # (N, C)
    z = g @ w_fc.T + b_fc                                                 # (N, d)
    att = jax.nn.softmax(z @ w_hl.T + b_hl, axis=1)                       # (N, 2C)
    high_att = att[:, :C, None].astype(f32)                               # (N, C, 1)
    low_att = att[:, C:, None].astype(f32)                                # (N, C, 1)

    # --- streamed fusion + 1x1 out-conv in Pallas ---
    sdt = low.dtype if stream_dtype is None else stream_dtype
    low_r = low.reshape(N, C, P).astype(sdt)
    high_r = high.reshape(N, C, P).astype(sdt)

    itemsize = jnp.dtype(sdt).itemsize
    if tile_p is None:
        tile_p = _choose_tile_p(P, C, itemsize)
    assert P % tile_p == 0, "tile_p must divide H*W"

    grid = (N, P // tile_p)

    img_spec = pl.BlockSpec((1, C, tile_p), lambda n, p: (n, 0, p))
    att_spec = pl.BlockSpec((1, C, 1), lambda n, p: (n, 0, 0))   # per-image, not per-tile
    w_spec = pl.BlockSpec((C, C), lambda n, p: (0, 0))
    b_spec = pl.BlockSpec((C, 1), lambda n, p: (0, 0))

    cost = pl.CostEstimate(
        flops=int(N * (2 * C * C * P + 3 * C * P)),
        transcendentals=0,
        bytes_accessed=int(N * 3 * C * P * itemsize + C * (C + 1) * 4),
    )

    out = pl.pallas_call(
        _sfconv_fuse_kernel,
        out_shape=jax.ShapeDtypeStruct((N, C, P), f32),
        grid_spec=pltpu.PrefetchScalarGridSpec(
            num_scalar_prefetch=0,
            grid=grid,
            in_specs=[att_spec, att_spec, img_spec, img_spec, w_spec, b_spec],
            out_specs=pl.BlockSpec((1, C, tile_p), lambda n, p: (n, 0, p)),
        ),
        compiler_params=pltpu.CompilerParams(
            dimension_semantics=("parallel", "parallel"),
            vmem_limit_bytes=32 * 1024 * 1024,
        ),
        cost_estimate=cost,
    )(high_att, low_att, low_r, high_r, params["w_out"], params["b_out"])

    return out.reshape(N, C, H, W)


def sfconv_reference(low, high, params):
    """Pure-JAX reference mirroring the PyTorch module (train-mode gap)."""
    N, C, H, W = low.shape
    w_fc, b_fc = params["w_fc"], params["b_fc"][:, 0]
    w_h, b_h = params["w_h"], params["b_h"][:, 0]
    w_l, b_l = params["w_l"], params["b_l"][:, 0]
    w_out, b_out = params["w_out"], params["b_out"][:, 0]

    g = (low + high).mean(axis=(2, 3))                    # (N, C)
    z = g @ w_fc.T + b_fc                                 # (N, d)
    ha = z @ w_h.T + b_h                                  # (N, C)
    la = z @ w_l.T + b_l                                  # (N, C)
    att = jax.nn.softmax(jnp.concatenate([ha, la], axis=1), axis=1)
    ha, la = att[:, :C], att[:, C:]
    fea = high * ha[:, :, None, None] + low * la[:, :, None, None]
    out = jnp.einsum('oc,nchw->nohw', w_out, fea) + b_out[None, :, None, None]
    return out


def make_params(key, features, r=2, L=32):
    d = max(features // r, L)
    ks = jax.random.split(key, 8)
    scale = 0.1
    return {
        "w_fc": scale * jax.random.normal(ks[0], (d, features), jnp.float32),
        "b_fc": scale * jax.random.normal(ks[1], (d, 1), jnp.float32),
        "w_h": scale * jax.random.normal(ks[2], (features, d), jnp.float32),
        "b_h": scale * jax.random.normal(ks[3], (features, 1), jnp.float32),
        "w_l": scale * jax.random.normal(ks[4], (features, d), jnp.float32),
        "b_l": scale * jax.random.normal(ks[5], (features, 1), jnp.float32),
        "w_out": scale * jax.random.normal(ks[6], (features, features), jnp.float32),
        "b_out": scale * jax.random.normal(ks[7], (features, 1), jnp.float32),
    }


# TODO(synk): only the train-mode gap (AdaptiveAvgPool2d(1)) is implemented; the
# test-mode AvgPool2d (cumsum box filter + replicate pad) path is not translated.

if __name__ == "__main__":
    key = jax.random.PRNGKey(0)
    k_low, k_high, k_par = jax.random.split(key, 3)

    N, C, H, W = 2, 32, 16, 16     # features=32 -> d = max(32//2, 32) = 32
    low = jax.random.normal(k_low, (N, C, H, W), jnp.float32)
    high = jax.random.normal(k_high, (N, C, H, W), jnp.float32)
    params = make_params(k_par, C)

    ref = jax.block_until_ready(sfconv_reference(low, high, params))

    # Default path (auto tile -> single spatial tile at this small size).
    out = jax.block_until_ready(sfconv_pallas(low, high, params))
    assert out.shape == (N, C, H, W)
    assert jnp.allclose(out, ref, atol=1e-4, rtol=1e-4), "mismatch vs reference"

    # Forced spatial-tiling path: grid = (N, P // 128) = (2, 2).
    out_t = jax.block_until_ready(sfconv_pallas(low, high, params, tile_p=128))
    assert jnp.allclose(out_t, ref, atol=1e-4, rtol=1e-4), "tiled mismatch vs reference"

    print("KERNEL_OK")
</pallas_src>

<mosaic_0001>
module attributes {stable_mosaic.version = 11 : i64} {
  func.func @_sfconv_fuse_kernel(%arg0: i32, %arg1: i32, %arg2: memref<1x32x1xf32, #tpu.memory_space<vmem>>, %arg3: memref<1x32x1xf32, #tpu.memory_space<vmem>>, %arg4: memref<1x32x256xf32, #tpu.memory_space<vmem>>, %arg5: memref<1x32x256xf32, #tpu.memory_space<vmem>>, %arg6: memref<32x32xf32, #tpu.memory_space<vmem>>, %arg7: memref<32x1xf32, #tpu.memory_space<vmem>>, %arg8: memref<1x32x256xf32, #tpu.memory_space<vmem>>) attributes {dimension_semantics = [#tpu.dimension_semantics<parallel>, #tpu.dimension_semantics<parallel>], iteration_bounds = array<i64: 2, 1>, scalar_prefetch = 0 : i64, scratch_operands = 0 : i64, tpu.core_type = #tpu.core_type<tc>, window_params = [{transform_indices = @transform_0, window_bounds = array<i64: 1, 32, 1>}, {transform_indices = @transform_1, window_bounds = array<i64: 1, 32, 1>}, {transform_indices = @transform_2, window_bounds = array<i64: 1, 32, 256>}, {transform_indices = @transform_3, window_bounds = array<i64: 1, 32, 256>}, {pipeline_mode = #tpu.pipeline_mode<synchronous>, transform_indices = @transform_4, window_bounds = array<i64: 32, 32>}, {pipeline_mode = #tpu.pipeline_mode<synchronous>, transform_indices = @transform_5, window_bounds = array<i64: 32, 1>}, {transform_indices = @transform_6, window_bounds = array<i64: 1, 32, 256>}]} {
    %c0 = arith.constant 0 : index
    %c0_0 = arith.constant 0 : index
    %c0_1 = arith.constant 0 : index
    %0 = vector.load %arg4[%c0, %c0_0, %c0_1] : memref<1x32x256xf32, #tpu.memory_space<vmem>>, vector<1x32x256xf32>
    %1 = vector.shape_cast %0 : vector<1x32x256xf32> to vector<32x256xf32>
    %c0_2 = arith.constant 0 : index
    %c0_3 = arith.constant 0 : index
    %c0_4 = arith.constant 0 : index
    %2 = vector.load %arg5[%c0_2, %c0_3, %c0_4] : memref<1x32x256xf32, #tpu.memory_space<vmem>>, vector<1x32x256xf32>
    %3 = vector.shape_cast %2 : vector<1x32x256xf32> to vector<32x256xf32>
    %c0_5 = arith.constant 0 : index
    %c0_6 = arith.constant 0 : index
    %c0_7 = arith.constant 0 : index
    %4 = vector.load %arg2[%c0_5, %c0_6, %c0_7] : memref<1x32x1xf32, #tpu.memory_space<vmem>>, vector<1x32x1xf32>
    %5 = vector.shape_cast %4 : vector<1x32x1xf32> to vector<32x1xf32>
    %c0_8 = arith.constant 0 : index
    %c0_9 = arith.constant 0 : index
    %c0_10 = arith.constant 0 : index
    %6 = vector.load %arg3[%c0_8, %c0_9, %c0_10] : memref<1x32x1xf32, #tpu.memory_space<vmem>>, vector<1x32x1xf32>
    %7 = vector.shape_cast %6 : vector<1x32x1xf32> to vector<32x1xf32>
    %8 = vector.broadcast %5 : vector<32x1xf32> to vector<32x256xf32>
    %9 = arith.mulf %3, %8 : vector<32x256xf32>
    %10 = vector.broadcast %7 : vector<32x1xf32> to vector<32x256xf32>
    %11 = arith.mulf %1, %10 : vector<32x256xf32>
    %12 = arith.addf %9, %11 : vector<32x256xf32>
    %c0_11 = arith.constant 0 : index
    %c0_12 = arith.constant 0 : index
    %13 = vector.load %arg6[%c0_11, %c0_12] : memref<32x32xf32, #tpu.memory_space<vmem>>, vector<32x32xf32>
    %cst = arith.constant dense<0.000000e+00> : vector<32x256xf32>
    %14 = tpu.matmul %13, %12, %cst {dimension_numbers = #tpu.dot_dimension_numbers<[1], [0], [0], [1], [0, 0, 1, 1], [], []>} : vector<32x32xf32>, vector<32x256xf32>, vector<32x256xf32> -> vector<32x256xf32>
    %c0_13 = arith.constant 0 : index
    %c0_14 = arith.constant 0 : index
    %15 = vector.load %arg7[%c0_13, %c0_14] : memref<32x1xf32, #tpu.memory_space<vmem>>, vector<32x1xf32>
    %16 = vector.broadcast %15 : vector<32x1xf32> to vector<32x256xf32>
    %17 = arith.addf %14, %16 : vector<32x256xf32>
    %c0_15 = arith.constant 0 : index
    %c0_16 = arith.constant 0 : index
    %c0_17 = arith.constant 0 : index
    %18 = vector.load %arg8[%c0_15, %c0_16, %c0_17] : memref<1x32x256xf32, #tpu.memory_space<vmem>>, vector<1x32x256xf32>
    %19 = vector.shape_cast %18 : vector<1x32x256xf32> to vector<32x256xf32>
    %20 = vector.shape_cast %17 : vector<32x256xf32> to vector<1x32x256xf32>
    tpu.vector_store %arg8[%c0_15, %c0_16, %c0_17], %20 {strides = array<i32>} : memref<1x32x256xf32, #tpu.memory_space<vmem>>, vector<1x32x256xf32>,
    return
  }
  func.func @transform_0(%arg0: i32, %arg1: i32) -> (i32, i32, i32) {
    %c0_i32 = arith.constant 0 : i32
    %c0_i32_0 = arith.constant 0 : i32
    %c0_i32_1 = arith.constant 0 : i32
    return %arg0, %c0_i32, %c0_i32_0 : i32, i32, i32
  }
  func.func @transform_1(%arg0: i32, %arg1: i32) -> (i32, i32, i32) {
    %c0_i32 = arith.constant 0 : i32
    %c0_i32_0 = arith.constant 0 : i32
    %c0_i32_1 = arith.constant 0 : i32
    return %arg0, %c0_i32, %c0_i32_0 : i32, i32, i32
  }
  func.func @transform_2(%arg0: i32, %arg1: i32) -> (i32, i32, i32) {
    %c0_i32 = arith.constant 0 : i32
    %c0_i32_0 = arith.constant 0 : i32
    return %arg0, %c0_i32, %arg1 : i32, i32, i32
  }
  func.func @transform_3(%arg0: i32, %arg1: i32) -> (i32, i32, i32) {
    %c0_i32 = arith.constant 0 : i32
    %c0_i32_0 = arith.constant 0 : i32
    return %arg0, %c0_i32, %arg1 : i32, i32, i32
  }
  func.func @transform_4(%arg0: i32, %arg1: i32) -> (i32, i32) {
    %c0_i32 = arith.constant 0 : i32
    %c0_i32_0 = arith.constant 0 : i32
    %c0_i32_1 = arith.constant 0 : i32
    return %c0_i32, %c0_i32_0 : i32, i32
  }
  func.func @transform_5(%arg0: i32, %arg1: i32) -> (i32, i32) {
    %c0_i32 = arith.constant 0 : i32
    %c0_i32_0 = arith.constant 0 : i32
    %c0_i32_1 = arith.constant 0 : i32
    return %c0_i32, %c0_i32_0 : i32, i32
  }
  func.func @transform_6(%arg0: i32, %arg1: i32) -> (i32, i32, i32) {
    %c0_i32 = arith.constant 0 : i32
    %c0_i32_0 = arith.constant 0 : i32
    return %arg0, %c0_i32, %arg1 : i32, i32, i32
  }
}

</mosaic_0001>

<bundles_post_ra>
// kernel: tpu_custom_call.1
= control target key start
LH: loop header
LB: loop body
LE: loop exit
PB: predicated region body
PF: predicated region fallthrough
CT: control target
= control target key end

     0   :  { %11 = vsyncpa [#allocation3], 0  ;;  %s1211_s0 = inlined_call_operand.vmem [shape: f32[2,32,1], index: 0, kind: input, shape index: {}]   ;;  %s1212_s1 = inlined_call_operand.vmem [shape: f32[2,32,1], index: 1, kind: input, shape index: {}]   ;;  %s1213_s2 = inlined_call_operand.vmem [shape: f32[2,32,256], index: 2, kind: input, shape index: {}]   ;;  %s1214_s3 = inlined_call_operand.hbm [shape: f32[2,32,256], index: 3, kind: input, shape index: {}]   ;;  %s1215_s4 = inlined_call_operand.vmem [shape: f32[32,32], index: 4, kind: input, shape index: {}]   ;;  %s1216_s5 = inlined_call_operand.vmem [shape: f32[32,1], index: 5, kind: input, shape index: {}]   ;;  %s1217_s6 = inlined_call_operand.hbm [shape: f32[2,32,256], index: 6, kind: output, shape index: {}]  }
   0x1   :  { %13 = vsyncpa [#allocation3 + $0x1], 0 }
   0x2   :  { %14 = vsyncpa [#allocation4], 0 }
   0x3   :  { %16 = vsyncpa [#allocation4 + $0x1], 0  ;;  %s998_s21 = smov 0   ;;  %s1000_s22 = smov 0  }
   0x4   :  { %s1002_s23 = smov 0   ;;  %s1004_s24 = smov 0  }
   0x5   :  { %s1006_s25 = smov 0   ;;  %s1008_s26 = smov 0  }
   0x6 LB: > { %s737_s27 = sadd.s32 4294967295, %s953_s26   ;;  %s738_s28 = sadd.s32 4294967294, %s953_s26   ;;  %s953_s26 = sphi %s1008_s26, %s22_s26   ;;  %s949_s25 = sphi %s1006_s25, %s1228_s25   ;;  %s945_s24 = sphi %s1004_s24, %s1227_s24   ;;  %s941_s23 = sphi %s1002_s23, %s1226_s23   ;;  %s937_s22 = sphi %s1000_s22, %s1225_s22   ;;  %s933_s21 = sphi %s998_s21, %s1224_s21  }
   0x7   : > { %s34_s29 = sadd.s32 1, %s949_s25  ;;  %s123_s30 = sadd.s32 1, %s941_s23 }
   0x8   : > { %p36_p0 = scmp.ge.s32.totalorder %s34_s29, 2  ;;  %p130_p1 = scmp.ne.s32.totalorder %s941_s23, %s937_s22 }
   0x9   : > { %p131_p2 = scmp.eq.s32.totalorder %s953_s26, 0  ;;  %p136_p3 = scmp.ne.s32.totalorder %s937_s22, %s933_s21 }
   0xa   : > { %s1230_s29 = smov (%p36_p0, %s34_s29), 0  ;;  %p137_p5 = scmp.eq.s32.totalorder %s737_s27, 0 }
   0xb   : > { %p1039_p4 = por %p131_p2, %p130_p1  ;;  %s118_s8 = ssub.s32 %s949_s25, %s1230_s29 }
   0xc   : > { %p204_p6 = scmp.eq.s32.totalorder %s737_s27, 1  ;;  %p121_p7 = scmp.eq.s32.totalorder %s118_s8, 0 }
   0xd   : > { %p1045_p8 = por %p137_p5, %p136_p3  ;;  %p210_p10 = scmp.eq.s32.totalorder %s738_s28, 1 }
   0xe   : > { %p1049_p9 = por %p204_p6, %p130_p1  ;;  %p787_p13 = scmp.lt.s32.totalorder %s953_s26, 2 }
   0xf   : > { %s1054_s11 = scalar_select %p121_p7, %s941_s23, %s123_s30  }
  0x10   : > { %p1056_p11 = por %p210_p10, %p136_p3  ;;  %s265_s13 = sand.u32 1, %s941_s23  }
  0x11   : > { %s741_s14 = sshll.u32 %s265_s13, 6  ;;  %s762_s15 = sshll.u32 %s949_s25, 10 }
  0x12   : > { %s277_s18 = scalar_lea.hbm %s1214_s3, %s762_s15  ;;  %s269_s19 = scalar_lea.vmem [#allocation2], %s741_s14 }
  0x13   : > { %s278_s20 = sshll.u32 %s269_s19, 4  ;;  %p1069_p0 = pnand %p787_p13, %p1039_p4  ;;  %s279_s20 = int_to_ptr.vmem [resolvable:$true] %s278_s20 }
  0x14   : > { %p744_p1 = scmp.ge.s32.totalorder %s953_s26, 1  ;;  %s266_s28 = scalar_lea.sflag [#allocation3], %s265_s13 }
  0x15   : > { %p847_p2 = pneg %p1069_p0  ;;  %s858_s30 = scalar_lea.vmem %s279_s20, 1024 }
  0x16   : > { %p859_p3 = scmp.ne.s32.totalorder %s279_s20, %s858_s30  ;;  %s955_s8 = smov [#allocation2]  }
  0x17   : > { %s863_s16 = sshll.u32 %s955_s8, 4  ;;  %s864_s16 = int_to_ptr.vmem [resolvable:$false] %s863_s16 }
  0x18   : > { %p861_p5 = pnand %p859_p3, %p847_p2  ;;  %s865_s14 = scalar_lea.vmem %s864_s16, 2048 }
  0x19   : > { %p866_p7 = scmp.lt.s32.totalorder %s279_s20, %s864_s16  ;;  %p867_p10 = scmp.lt.s32.totalorder %s865_s14, %s858_s30 }
  0x1a   : > { %p862_p6 = pneg %p861_p5 }
  0x1b   : > { %p868_p12 = por %p867_p10, %p866_p7 }
  0x1d   : > { %p869_p4 = pnand %p868_p12, %p862_p6 }
  0x1f   : > { %872 = shalt.err (!%p869_p4)
}
  0x20   : > { %s956_s7 = smov 256   ;;  %s957_s13 = smov 16  }
  0x21   : > { %782 = dma.hbm_to_vmem [thread:$0]  (!%p1069_p0), %s277_s18, 1024, %s279_s20, %s266_s28, %s956_s7, %s956_s7, %s957_s13  }
  0x22   : > { %p286_p13 = scmp.lt.s32.totalorder %s953_s26, 3 }
  0x24   : > { %p287_p2 = pnand %p744_p1, %p286_p13 }
  0x25   : > { %s1082_s15 = sand.u32 (!%p287_p2), 1, %s937_s22  }
  0x26   : > { %290 = sbr.rel (%p287_p2) target bundleno = 408 (0x198), region = 44  ;;  %s745_s17 = sshll.u32 (!%p287_p2), %s1082_s15, 6 }
  0x27   : > { %s293_s19 = scalar_lea.sflag (!%p287_p2), [#allocation3], %s1082_s15  ;;  %s1088_s30 = scalar_lea.vmem (!%p287_p2), [#allocation2], %s745_s17 }
  0x2b   : > { %924 = dma.done.wait (%p1045_p8), %s293_s19, 1024  }
  0x2c   : > { %926 = vsyncadd (%p1045_p8), %s293_s19, 4294966272  ;;  %p344_p12 = scmp.lt.s32.totalorder %s945_s24, 1  ;;  %v958_v0 = vmov 0   ;;  %v459_v9 = vld [vmem:[%s1216_s5 + $0x8] sm:$0xff]  ;;  %v458_v10 = vld [vmem:[%s1216_s5] sm:$0xff]  ;;  %v959_v11 = vmov 0.0  }
  0x2d   : > { %844 = vset.pattern.permute.xlu1 %v958_v0  ;;  %843 = vset.pattern.permute.xlu0 %v958_v0  ;;  %v461_v12 = vld [vmem:[%s1216_s5 + $0x18] sm:$0xff]  ;;  %v460_v13 = vld [vmem:[%s1216_s5 + $0x10] sm:$0xff]  ;;  %v379_v21 = vld [vmem:[%s1088_s30 + $0x28] sm:$0xff]  ;;  %vm482_vm0 = vcmask 261120   ;;  %s766_s9 = sshll.u32 %s945_s24, 10  ;;  %s960_s19 = smov [#allocation5]  }
  0x2e   : > { %s1096_s18 = scalar_select %p344_p12, %s945_s24, 1  ;;  %559 = vmatprep.mubr.f32.mxu0 %v959_v11  ;;  %571 = vmatprep.mubr.f32.mxu1 %v959_v11  ;;  %v380_v16 = vld [vmem:[%s1088_s30 + $0x30] sm:$0xff]  ;;  %v381_v17 = vld [vmem:[%s1088_s30 + $0x38] sm:$0xff]  ;;  %v378_v27 = vld [vmem:[%s1088_s30 + $0x20] sm:$0xff] }
  0x2f   : > { %v376_v35 = vld [vmem:[%s1088_s30 + $0x10] sm:$0xff]  ;;  %v377_v36 = vld [vmem:[%s1088_s30 + $0x18] sm:$0xff]  ;;  %v374_v50 = vld [vmem:[%s1088_s30] sm:$0xff]  ;;  %s593_s24 = scalar_lea.sflag [#allocation4], %s1082_s15 }
  0x30   : > { %s763_s20 = sshll.u32 %s1096_s18, 5  ;;  %s765_s14 = sshll.u32 %s1096_s18, 6  ;;  %v375_v51 = vld [vmem:[%s1088_s30 + $0x8] sm:$0xff]  ;;  %v454_v62 = vld [vmem:[%s1215_s4] sm:$0xff]  ;;  %v456_v63 = vld [vmem:[%s1215_s4 + $0x10] sm:$0xff] }
  0x31   : > { %s348_s8 = scalar_lea.vmem %s1211_s0, %s763_s20  ;;  %s353_s7 = scalar_lea.vmem %s1212_s1, %s763_s20  ;;  %v455_v0 = vld [vmem:[%s1215_s4 + $0x8] sm:$0xff] }
  0x32   : > { %v385_v1 = vld [vmem:[%s348_s8 + $0x18] sm:$0xff]  ;;  %v384_v2 = vld [vmem:[%s348_s8 + $0x10] sm:$0xff]  ;;  %v387_v5 = vld [vmem:[%s353_s7 + $0x8] sm:$0xff]  ;;  %s1123_s13 = scalar_lea.vmem %s1213_s2, %s765_s14  ;;  %s343_s14 = scalar_lea.vmem [#allocation5], %s745_s17 }
  0x33   : > { %407 = vperm.xlu0 %843, %v385_v1   ;;  %402 = vperm.xlu1 %844, %v384_v2   ;;  %v389_v3 = vld [vmem:[%s353_s7 + $0x18] sm:$0xff]  ;;  %v388_v4 = vld [vmem:[%s353_s7 + $0x10] sm:$0xff]  ;;  %v383_v6 = vld [vmem:[%s348_s8 + $0x8] sm:$0xff]  ;;  %s1163_s30 = scalar_lea.hbm %s1217_s6, %s766_s9  ;;  %s877_s20 = sshll.u32 %s960_s19, 4  ;;  %s878_s20 = int_to_ptr.vmem [resolvable:$false] %s877_s20 }
  0x34   : > { %v386_v7 = vld [vmem:[%s353_s7] sm:$0xff]  ;;  %v372_v18 = vld [vmem:[%s1123_s13 + $0x30] sm:$0xff]  ;;  %v373_v19 = vld [vmem:[%s1123_s13 + $0x38] sm:$0xff]  ;;  %s608_s7 = sshll.u32 %s343_s14, 4  ;;  %s879_s27 = scalar_lea.vmem %s878_s20, 2048  ;;  %s1158_s7 = int_to_ptr.vmem [resolvable:$true] %s608_s7 }
  0x35   : > { %v382_v8 = vld [vmem:[%s348_s8] sm:$0xff]  ;;  %v371_v20 = vld [vmem:[%s1123_s13 + $0x28] sm:$0xff]  ;;  %v368_v31 = vld [vmem:[%s1123_s13 + $0x10] sm:$0xff]  ;;  %s873_s18 = scalar_lea.vmem %s1158_s7, 1024  ;;  %p880_p3 = scmp.lt.s32.totalorder %s1158_s7, %s878_s20 }
  0x36   : > { %v370_v22 = vld [vmem:[%s1123_s13 + $0x20] sm:$0xff]  ;;  %v369_v34 = vld [vmem:[%s1123_s13 + $0x18] sm:$0xff]  ;;  %v367_v49 = vld [vmem:[%s1123_s13 + $0x8] sm:$0xff]  ;;  %p874_p8 = scmp.ne.s32.totalorder %s1158_s7, %s873_s18  ;;  %p881_p5 = scmp.lt.s32.totalorder %s879_s27, %s873_s18 }
  0x37   : > { %435 = vperm.xlu0 %843, %v389_v3   ;;  %430 = vperm.xlu1 %844, %v388_v4   ;;  %v366_v47 = vld [vmem:[%s1123_s13] sm:$0xff]  ;;  %v457_v1 = vld [vmem:[%s1215_s4 + $0x18] sm:$0xff] }
  0x38   : > { %p875_p0 = pnand %p874_p8, %p1049_p9  ;;  %p882_p6 = por %p881_p5, %p880_p3 }
  0x3a   : > { %p876_p1 = pneg %p875_p0 }
  0x3b   : > { %425 = vperm.xlu1 %844, %v387_v5   ;;  %397 = vperm.xlu0 %843, %v383_v6  }
  0x3c   : > { %p883_p7 = pnand %p882_p6, %p876_p1 }
  0x3f   : > { %420 = vperm.xlu1 %844, %v386_v7   ;;  %392 = vperm.xlu0 %843, %v382_v8  }
  0x43   : > { %469 = vperm.xlu1 %844, %v459_v9   ;;  %464 = vperm.xlu0 %843, %v458_v10  }
  0x47   : > { %479 = vperm.xlu1 %844, %v461_v12   ;;  %474 = vperm.xlu0 %843, %v460_v13  }
  0xae   : > { %v408_v14 = vpop.permute.xlu0 %407  ;;  %v403_v15 = vpop.permute.xlu1 %402 }
  0xaf   : > { %v416_v23 = vmul.f32 %v408_v14, %v380_v16  ;;  %v417_v26 = vmul.f32 %v408_v14, %v381_v17  ;;  %v415_v32 = vmul.f32 %v403_v15, %v379_v21  ;;  %v414_v39 = vmul.f32 %v403_v15, %v378_v27 }
  0xb2   : > { %v436_v24 = vpop.permute.xlu0 %435  ;;  %v431_v25 = vpop.permute.xlu1 %430 }
  0xb3   : > { %v444_v28 = vmul.f32 %v436_v24, %v372_v18  ;;  %v445_v29 = vmul.f32 %v436_v24, %v373_v19  ;;  %v443_v30 = vmul.f32 %v431_v25, %v371_v20  ;;  %v442_v33 = vmul.f32 %v431_v25, %v370_v22 }
  0xb5   : > { %v453_v37 = vadd.f32 %v445_v29, %v417_v26  ;;  %v452_v38 = vadd.f32 %v444_v28, %v416_v23  ;;  %v451_v40 = vadd.f32 %v443_v30, %v415_v32  ;;  %v450_v48 = vadd.f32 %v442_v33, %v414_v39 }
  0xb6   : > { %v426_v41 = vpop.permute.xlu1 %425  ;;  %v398_v42 = vpop.permute.xlu0 %397 }
  0xb7   : > { %v440_v43 = vmul.f32 %v426_v41, %v368_v31  ;;  %v441_v44 = vmul.f32 %v426_v41, %v369_v34  ;;  %v412_v45 = vmul.f32 %v398_v42, %v376_v35  ;;  %v413_v46 = vmul.f32 %v398_v42, %v377_v36  ;;  %519 = vmatprep.subr.mxu0 %v453_v37 }
  0xb8   : > { %767 = vmatprep.subr.mxu1 %v453_v37  ;;  %520 = vmatpush1.msra.mxu0 %v452_v38 }
  0xb9   : > { %v448_v52 = vadd.f32 %v440_v43, %v412_v45  ;;  %v449_v53 = vadd.f32 %v441_v44, %v413_v46  ;;  %771 = vmatpush1.msra.mxu1 %v452_v38  ;;  %521 = vmatprep.subr.mxu0 %v451_v40 }
  0xba   : > { %768 = vmatprep.subr.mxu1 %v451_v40  ;;  %v421_v54 = vpop.permute.xlu1 %420  ;;  %v393_v55 = vpop.permute.xlu0 %392  ;;  %522 = vmatpush1.msra.mxu0 %v450_v48 }
  0xbb   : > { %v438_v56 = vmul.f32 %v421_v54, %v366_v47  ;;  %v439_v57 = vmul.f32 %v421_v54, %v367_v49  ;;  %v410_v58 = vmul.f32 %v393_v55, %v374_v50  ;;  %v411_v59 = vmul.f32 %v393_v55, %v375_v51  ;;  %772 = vmatpush1.msra.mxu1 %v450_v48 }
  0xbc   : > { %523 = vmatprep.subr.mxu0 %v449_v53  ;;  %769 = vmatprep.subr.mxu1 %v449_v53 }
  0xbd   : > { %v446_v60 = vadd.f32 %v438_v56, %v410_v58  ;;  %v447_v61 = vadd.f32 %v439_v57, %v411_v59  ;;  %524 = vmatpush1.msra.mxu0 %v448_v52  ;;  %773 = vmatpush1.msra.mxu1 %v448_v52 }
  0xbe   : > { %v465_v2 = vpop.permute.xlu0 %464  ;;  %v470_v3 = vpop.permute.xlu1 %469 }
  0xbf   : > { %525 = vmatprep.subr.mxu0 %v447_v61  ;;  %770 = vmatprep.subr.mxu1 %v447_v61 }
  0xc0   : > { %526 = vmatpush1.msra.mxu0 %v446_v60  ;;  %774 = vmatpush1.msra.mxu1 %v446_v60 }
  0xc1   : > { %753 = vmatmul.mubr.msk.f32.vlgmr.msra.gmra.mxu0 %vm482_vm0, %v454_v62  ;;  %755 = vmatmul.mubr.msk.f32.vlgmr.msra.gmra.mxu1 %vm482_vm0, %v456_v63 }
  0xc2   : > { %565 = vmatprep.mubr.f32.mxu0 %v959_v11  ;;  %577 = vmatprep.mubr.f32.mxu1 %v959_v11  ;;  %v475_v4 = vpop.permute.xlu0 %474  ;;  %v480_v11 = vpop.permute.xlu1 %479 }
  0xc5   : > { %754 = vmatmul.mubr.msk.f32.gmra.mxu0 %vm482_vm0, %v455_v0  ;;  %756 = vmatmul.mubr.msk.f32.gmra.mxu1 %vm482_vm0, %v457_v1 }
 0x181   : > { %v561_v5 = vpop.f32.mrf.mxu0  ;;  %v573_v6 = vpop.f32.mrf.mxu1 }
 0x182   : > { %v562_v7 = vadd.f32 %v561_v5, %v465_v2  ;;  %v574_v8 = vadd.f32 %v573_v6, %v475_v4 }
 0x183   : > { %v563_v9 = vpop.f32.mrf.mxu0  ;;  %v575_v10 = vpop.f32.mrf.mxu1 }
 0x184   : > { %584 = vst [vmem:[%s343_s14] sm:$0xff] %v562_v7  ;;  %588 = vst [vmem:[%s343_s14 + $0x20] sm:$0xff] %v574_v8  ;;  %v564_v12 = vadd.f32 %v563_v9, %v465_v2  ;;  %v576_v13 = vadd.f32 %v575_v10, %v475_v4 }
 0x185   : > { %v567_v14 = vpop.f32.mrf.mxu0  ;;  %v579_v15 = vpop.f32.mrf.mxu1 }
 0x186   : > { %585 = vst [vmem:[%s343_s14 + $0x8] sm:$0xff] %v564_v12  ;;  %589 = vst [vmem:[%s343_s14 + $0x28] sm:$0xff] %v576_v13  ;;  %v568_v16 = vadd.f32 %v567_v14, %v470_v3  ;;  %v580_v17 = vadd.f32 %v579_v15, %v480_v11 }
 0x187   : > { %v569_v18 = vpop.f32.mrf.mxu0  ;;  %v581_v19 = vpop.f32.mrf.mxu1 }
 0x188   : > { %586 = vst [vmem:[%s343_s14 + $0x10] sm:$0xff] %v568_v16  ;;  %590 = vst [vmem:[%s343_s14 + $0x30] sm:$0xff] %v580_v17  ;;  %v570_v20 = vadd.f32 %v569_v18, %v470_v3  ;;  %v582_v21 = vadd.f32 %v581_v19, %v480_v11 }
 0x18a   : > { %587 = vst [vmem:[%s343_s14 + $0x18] sm:$0xff] %v570_v20  ;;  %591 = vst [vmem:[%s343_s14 + $0x38] sm:$0xff] %v582_v21 }
 0x18b   : > { %886 = shalt.err (!%p883_p7)
}
 0x18c   : > { %s887_s28 = scalar_lea.hbm %s1163_s30, 1024  ;;  %s891_s14 = scalar_lea.hbm %s1217_s6, 2048 }
 0x18d   : > { %p888_p10 = scmp.ne.s32.totalorder %s1163_s30, %s887_s28  ;;  %p892_p2 = scmp.lt.s32.totalorder %s1163_s30, %s1217_s6 }
 0x18e   : > { %p893_p12 = scmp.lt.s32.totalorder %s891_s14, %s887_s28 }
 0x18f   : > { %p889_p4 = pnand %p888_p10, %p1049_p9 }
 0x190   : > { %p894_p8 = por %p893_p12, %p892_p2 }
 0x191   : > { %p890_p13 = pneg %p889_p4 }
 0x193   : > { %p895_p0 = pnand %p894_p8, %p890_p13 }
 0x195   : > { %898 = shalt.err (!%p895_p0)
}
 0x196   : > { %s961_s13 = smov 256   ;;  %s962_s18 = smov 16  }
 0x197   : > { %777 = dma.vmem_to_hbm [thread:$0]  (%p1049_p9), %s1158_s7, 1024, %s1163_s30, %s593_s24, %s961_s13, %s961_s13, %s962_s18  }
 0x198 PF: > { %s623_s19 = sand.u32 1, %s933_s21   ;;  %p1223_p1 = scmp.ge.s32.totalorder %s953_s26, 2 }
 0x199   : > { %s624_s20 = scalar_lea.sflag [#allocation4], %s623_s19 }
 0x19a   : > { %p784_p3 = pnand %p1223_p1, %p1056_p11 }
 0x19c   : > { %p785_p5 = pneg %p784_p3 }
 0x19e   : > { %928 = dma.done.wait (%p785_p5), %s624_s20, 1024  }
 0x19f   : > { %930 = vsyncadd (%p785_p5), %s624_s20, 4294966272  ;;  %s22_s26 = sadd.s32 1, %s953_s26   ;;  %s1224_s21 = smov %s937_s22 }
 0x1a0   : > { %p19_p6 = scmp.ge.s32.totalorder %s22_s26, 4   ;;  %s1225_s22 = smov %s941_s23 }
 0x1a1   : > { %s1226_s23 = smov %s1054_s11  ;;  %s1227_s24 = smov %s949_s25 }
 0x1a2   : > { %s1228_s25 = smov %s1230_s29  ;;  %21 = sbr.rel (!%p19_p6) target bundleno = 6 (0x6), region = 98 }
 0x1a7   :  { %629 = vsyncpa [#allocation3], 1 }
 0x1a8   :  { %631 = vsyncpa [#allocation3 + $0x1], 1 }
 0x1a9   :  { %632 = vsyncpa [#allocation4], 1 }
 0x1aa   :  { %634 = vsyncpa [#allocation4 + $0x1], 1 }

</bundles_post_ra>
